<compile_context>
chip_gen: v7x
topology: tpu7x:2x2x1
jax: 0.10.0
libtpu: 0.0.40
codegen_flags: <defaults>
</compile_context>

<pallas_src>
import functools

import jax
import jax.numpy as jnp
from jax.experimental import pallas as pl
from jax.experimental.pallas import tpu as pltpu


def _round_up(a, b):
    return (a + b - 1) // b * b


# --------------------------------------------------------------------------
# Kernel bodies
# --------------------------------------------------------------------------

def _ffn_core(x, w1, b1, w2, b2):
    """bf16 x bf16 -> f32 MXU matmuls; bias + ReLU in f32."""
    h = jnp.dot(x, w1, preferred_element_type=jnp.float32)
    h = jnp.maximum(h + b1, 0.0)
    y = jnp.dot(h.astype(w2.dtype), w2, preferred_element_type=jnp.float32)
    return y + b2


def _apply_dropout(y, u, rate, scale):
    # Inverted dropout: keep with prob (1 - rate), scale kept values.
    keep = u >= jnp.float32(rate)
    return jnp.where(keep, y * jnp.float32(scale), 0.0)


def _make_resident_kernel(dropout_cfg):
    """Weights fully VMEM-resident; 1-D grid over row tiles."""
    if dropout_cfg is None:
        def kernel(x_ref, w1_ref, b1_ref, w2_ref, b2_ref, o_ref):
            y = _ffn_core(x_ref[...], w1_ref[...], b1_ref[...],
                          w2_ref[...], b2_ref[...])
            o_ref[...] = y.astype(o_ref.dtype)
    else:
        rate, scale = dropout_cfg

        def kernel(x_ref, w1_ref, b1_ref, w2_ref, b2_ref, u_ref, o_ref):
            y = _ffn_core(x_ref[...], w1_ref[...], b1_ref[...],
                          w2_ref[...], b2_ref[...])
            y = _apply_dropout(y, u_ref[...], rate, scale)
            o_ref[...] = y.astype(o_ref.dtype)
    return kernel


def _make_streamed_kernel(dropout_cfg):
    """Hidden dim streamed over grid axis 1 with an f32 VMEM accumulator."""

    def body(x_ref, w1_ref, b1_ref, w2_ref, b2_ref, u_ref, o_ref, acc_ref):
        j = pl.program_id(1)          # top-level only (not inside pl.when)

        @pl.when(j == 0)
        def _init():
            acc_ref[...] = jnp.zeros_like(acc_ref)

        h = jnp.dot(x_ref[...], w1_ref[...], preferred_element_type=jnp.float32)
        h = jnp.maximum(h + b1_ref[...], 0.0)
        acc_ref[...] += jnp.dot(h.astype(w2_ref.dtype), w2_ref[...],
                                preferred_element_type=jnp.float32)

        @pl.when(j == pl.num_programs(1) - 1)
        def _finalize():
            y = acc_ref[...] + b2_ref[...]
            if dropout_cfg is not None:
                rate, scale = dropout_cfg
                y = _apply_dropout(y, u_ref[...], rate, scale)
            o_ref[...] = y.astype(o_ref.dtype)

    if dropout_cfg is None:
        def kernel(x_ref, w1_ref, b1_ref, w2_ref, b2_ref, o_ref, acc_ref):
            body(x_ref, w1_ref, b1_ref, w2_ref, b2_ref, None, o_ref, acc_ref)
    else:
        def kernel(x_ref, w1_ref, b1_ref, w2_ref, b2_ref, u_ref, o_ref, acc_ref):
            body(x_ref, w1_ref, b1_ref, w2_ref, b2_ref, u_ref, o_ref, acc_ref)
    return kernel


# --------------------------------------------------------------------------
# Geometry / VMEM planning
# --------------------------------------------------------------------------

def _vmem_limit_bytes():
    cap = 128 * 1024 * 1024
    try:
        info = pltpu.get_tpu_info()
        cap = int(getattr(info, "vmem_capacity_bytes", cap) or cap)
    except Exception:
        pass
    # Leave headroom for Mosaic internal scratch; don't request the whole VMEM.
    return max(32 * 1024 * 1024, min(cap - 16 * 1024 * 1024, 110 * 1024 * 1024))


def _choose_geometry(M, C_pad, H_pad, out_itemsize, use_dropout, budget):
    mask_b = 4 if use_dropout else 0

    def row_tile_bytes(tm):
        # x (bf16) + out + dropout mask, each double-buffered.
        return 2 * tm * C_pad * (2 + out_itemsize + mask_b)

    tm_cap = _round_up(M, 8)
    tm_candidates = [t for t in (1024, 768, 512, 384, 256, 128, 64, 32, 16, 8)
                     if t <= tm_cap] or [8]

    # Fast path: W1 + W2 resident in VMEM (counted double-buffered, conservative).
    w_resident = 2 * (2 * C_pad * H_pad * 2) + 2 * (H_pad + C_pad) * 4
    for tm in tm_candidates:
        if w_resident + row_tile_bytes(tm) <= budget:
            return "resident", tm, H_pad

    # Streamed path: W1/W2 chunked over H (tile_h must divide H_pad).
    th_candidates = [t for t in (1024, 512, 256, 128)
                     if t <= H_pad and H_pad % t == 0] or [128]
    for tm in tm_candidates:
        for th in th_candidates:
            w_stream = 2 * (2 * C_pad * th * 2) + 2 * th * 4 + 2 * C_pad * 4
            acc = tm * C_pad * 4
            if w_stream + row_tile_bytes(tm) + acc <= budget:
                return "streamed", tm, th
    return "streamed", 8, 128


# --------------------------------------------------------------------------
# Public API
# --------------------------------------------------------------------------

def prepare_ffn_params(w1, b1, w2, b2, *, compute_dtype=jnp.bfloat16):
    """Pad (lane-dense) and cast weights ONCE; hoisted out of the hot path."""
    C, H = w1.shape
    C_pad = _round_up(C, 128)
    H_pad = _round_up(H, 128)
    return dict(
        C=C, H=H, C_pad=C_pad, H_pad=H_pad, compute_dtype=compute_dtype,
        w1=jnp.pad(w1.astype(compute_dtype), ((0, C_pad - C), (0, H_pad - H))),
        w2=jnp.pad(w2.astype(compute_dtype), ((0, H_pad - H), (0, C_pad - C))),
        b1=jnp.pad(b1.astype(jnp.float32), ((0, H_pad - H),)).reshape(1, H_pad),
        b2=jnp.pad(b2.astype(jnp.float32), ((0, C_pad - C),)).reshape(1, C_pad),
    )


def feed_forward(x, params, *, dropout_rate=0.0, training=False, seed=0,
                 mode=None, tile_m=None, tile_h=None):
    """x: (B, T, C) -> (B, T, C).  params from prepare_ffn_params()."""
    assert 0.0 <= float(dropout_rate) < 1.0
    orig_dtype = x.dtype
    B, T, C = x.shape
    assert C == params["C"], "x feature dim does not match prepared params"
    C_pad, H_pad = params["C_pad"], params["H_pad"]
    compute_dtype = params["compute_dtype"]
    M = B * T
    use_dropout = bool(training) and float(dropout_rate) > 0.0
    out_itemsize = jnp.dtype(orig_dtype).itemsize

    # ---- per-chip geometry -------------------------------------------------
    vmem_limit = _vmem_limit_bytes()
    auto_mode, auto_tm, auto_th = _choose_geometry(
        M, C_pad, H_pad, out_itemsize, use_dropout, int(vmem_limit * 0.9))
    mode = mode or auto_mode
    if tile_m is None:
        # Keep >= 2 row tiles when possible so both v7x TensorCores get work.
        tile_m = min(auto_tm, max(8, _round_up((M + 1) // 2, 8)))
    if tile_h is None:
        tile_h = auto_th
    assert tile_m % 8 == 0
    M_pad = _round_up(M, tile_m)
    n_row_tiles = M_pad // tile_m

    # ---- operand staging (zero padding contributes exact zeros) ------------
    x2d = jnp.pad(x.reshape(M, C).astype(compute_dtype),
                  ((0, M_pad - M), (0, C_pad - C)))

    dropout_cfg = None
    extra_inputs = []
    if use_dropout:
        rate = float(dropout_rate)
        dropout_cfg = (rate, 1.0 / (1.0 - rate))
        # Grid-/tile-independent mask stream, generated once per call.
        u = jax.random.uniform(jax.random.PRNGKey(int(seed)),
                               (M_pad, C_pad), dtype=jnp.float32)
        extra_inputs.append(u)

    # ---- grid / specs -------------------------------------------------------
    if mode == "resident":
        kernel = _make_resident_kernel(dropout_cfg)
        grid = (n_row_tiles,)
        in_specs = [
            pl.BlockSpec((tile_m, C_pad), lambda i: (i, 0)),   # x tile
            pl.BlockSpec((C_pad, H_pad),  lambda i: (0, 0)),   # W1 (resident)
            pl.BlockSpec((1, H_pad),      lambda i: (0, 0)),   # b1
            pl.BlockSpec((H_pad, C_pad),  lambda i: (0, 0)),   # W2 (resident)
            pl.BlockSpec((1, C_pad),      lambda i: (0, 0)),   # b2
        ]
        if use_dropout:
            in_specs.append(pl.BlockSpec((tile_m, C_pad), lambda i: (i, 0)))
        out_spec = pl.BlockSpec((tile_m, C_pad), lambda i: (i, 0))
        scratch_shapes = []
        dim_sems = ("parallel",)
        weight_passes = 1
    else:
        assert tile_h % 128 == 0 and H_pad % tile_h == 0
        kernel = _make_streamed_kernel(dropout_cfg)
        grid = (n_row_tiles, H_pad // tile_h)
        in_specs = [
            pl.BlockSpec((tile_m, C_pad), lambda i, j: (i, 0)),  # x tile
            pl.BlockSpec((C_pad, tile_h), lambda i, j: (0, j)),  # W1 chunk
            pl.BlockSpec((1, tile_h),     lambda i, j: (0, j)),  # b1 chunk
            pl.BlockSpec((tile_h, C_pad), lambda i, j: (j, 0)),  # W2 chunk
            pl.BlockSpec((1, C_pad),      lambda i, j: (0, 0)),  # b2
        ]
        if use_dropout:
            in_specs.append(pl.BlockSpec((tile_m, C_pad), lambda i, j: (i, 0)))
        out_spec = pl.BlockSpec((tile_m, C_pad), lambda i, j: (i, 0))
        scratch_shapes = [pltpu.VMEM((tile_m, C_pad), jnp.float32)]
        dim_sems = ("parallel", "arbitrary")
        weight_passes = n_row_tiles          # W1/W2 re-streamed per row tile

    cdt = jnp.dtype(compute_dtype).itemsize
    bytes_accessed = (
        M_pad * C_pad * cdt                                 # x
        + weight_passes * 2 * C_pad * H_pad * cdt           # W1 + W2
        + weight_passes * (H_pad + C_pad) * 4               # biases
        + M_pad * C_pad * out_itemsize                      # y
        + (M_pad * C_pad * 4 if use_dropout else 0))        # dropout mask
    cost = pl.CostEstimate(flops=int(4 * M_pad * H_pad * C_pad),
                           transcendentals=0,
                           bytes_accessed=int(bytes_accessed))

    out2d = pl.pallas_call(
        kernel,
        out_shape=jax.ShapeDtypeStruct((M_pad, C_pad), orig_dtype),
        grid_spec=pltpu.PrefetchScalarGridSpec(
            num_scalar_prefetch=0,
            grid=grid,
            in_specs=in_specs,
            out_specs=out_spec,
            scratch_shapes=scratch_shapes,
        ),
        compiler_params=pltpu.CompilerParams(
            dimension_semantics=dim_sems,
            vmem_limit_bytes=int(vmem_limit)),
        cost_estimate=cost,
    )(x2d, params["w1"], params["b1"], params["w2"], params["b2"], *extra_inputs)

    return out2d[:M, :C].reshape(B, T, C)


def feed_forward_ref(x, w1, b1, w2, b2, compute_dtype=jnp.bfloat16):
    """Pure-JAX reference, same bf16-in / f32-accumulate numerics (eval mode)."""
    xc = x.astype(compute_dtype)
    h = jnp.dot(xc, w1.astype(compute_dtype),
                preferred_element_type=jnp.float32) + b1
    h = jnp.maximum(h, 0.0)
    y = jnp.dot(h.astype(compute_dtype), w2.astype(compute_dtype),
                preferred_element_type=jnp.float32) + b2
    return y


# --------------------------------------------------------------------------
# Self-test
# --------------------------------------------------------------------------

if __name__ == "__main__":
    # Small shapes consistent with the module: n_embd=32, hidden=4*n_embd=128.
    B, T, C = 2, 8, 32
    H = 4 * C
    hyper_p = {"dropout": 0.1}
    p = hyper_p["dropout"]

    key = jax.random.PRNGKey(0)
    kx, k1, k2, k3, k4 = jax.random.split(key, 5)
    x = jax.random.normal(kx, (B, T, C), dtype=jnp.float32)
    # nn.Linear-style uniform init, bound = 1/sqrt(fan_in).
    w1 = jax.random.uniform(k1, (C, H), jnp.float32, -1.0 / C**0.5, 1.0 / C**0.5)
    b1 = jax.random.uniform(k2, (H,),   jnp.float32, -1.0 / C**0.5, 1.0 / C**0.5)
    w2 = jax.random.uniform(k3, (H, C), jnp.float32, -1.0 / H**0.5, 1.0 / H**0.5)
    b2 = jax.random.uniform(k4, (C,),   jnp.float32, -1.0 / H**0.5, 1.0 / H**0.5)

    params = prepare_ffn_params(w1, b1, w2, b2)   # pad/cast hoisted, done once
    ref = feed_forward_ref(x, w1, b1, w2, b2)

    # --- eval mode, auto geometry (weights-resident fast path) ---------------
    out = jax.block_until_ready(
        feed_forward(x, params, dropout_rate=p, training=False))
    assert out.shape == (B, T, C)
    assert jnp.allclose(out, ref, atol=3e-3, rtol=1e-2), "resident path mismatch"

    # --- eval mode, forced H-streamed path (accumulator kernel) --------------
    out_s = jax.block_until_ready(
        feed_forward(x, params, dropout_rate=p, training=False,
                     mode="streamed", tile_h=128))
    assert jnp.allclose(out_s, ref, atol=3e-3, rtol=1e-2), "streamed path mismatch"

    # --- training mode: fused inverted dropout (resident path) ---------------
    out_tr = jax.block_until_ready(
        feed_forward(x, params, dropout_rate=p, training=True, seed=123))
    assert out_tr.shape == (B, T, C)
    assert bool(jnp.all(jnp.isfinite(out_tr)))
    dropped = jnp.abs(out_tr) < 1e-8
    n_drop = int(jnp.sum(dropped))
    assert 0 < n_drop < out_tr.size, "dropout mask degenerate"
    kept_ok = jnp.isclose(out_tr, out / (1.0 - p), atol=1e-5, rtol=1e-5)
    assert bool(jnp.all(dropped | kept_ok)), "dropout scaling wrong"

    # --- training mode on the streamed path: same seed -> same mask ----------
    out_tr_s = jax.block_until_ready(
        feed_forward(x, params, dropout_rate=p, training=True, seed=123,
                     mode="streamed", tile_h=128))
    assert jnp.allclose(out_tr_s, out_tr, atol=1e-5, rtol=1e-5)

    # --- multi-chunk H streaming (2 hidden chunks, exercises accumulation) ---
    H2 = 2 * H
    k5, k6, k7, k8 = jax.random.split(jax.random.PRNGKey(1), 4)
    w1b = jax.random.uniform(k5, (C, H2), jnp.float32, -1.0 / C**0.5, 1.0 / C**0.5)
    b1b = jax.random.uniform(k6, (H2,),   jnp.float32, -1.0 / C**0.5, 1.0 / C**0.5)
    w2b = jax.random.uniform(k7, (H2, C), jnp.float32, -1.0 / H2**0.5, 1.0 / H2**0.5)
    b2b = jax.random.uniform(k8, (C,),    jnp.float32, -1.0 / H2**0.5, 1.0 / H2**0.5)
    params_b = prepare_ffn_params(w1b, b1b, w2b, b2b)
    ref_b = feed_forward_ref(x, w1b, b1b, w2b, b2b)
    out_b = jax.block_until_ready(
        feed_forward(x, params_b, training=False, mode="streamed", tile_h=128))
    assert jnp.allclose(out_b, ref_b, atol=3e-3, rtol=1e-2), "multi-chunk mismatch"

    print("KERNEL_OK")
</pallas_src>

<mosaic_0001>
module attributes {stable_mosaic.version = 11 : i64} {
  func.func @kernel(%arg0: i32, %arg1: memref<8x128xbf16, #tpu.memory_space<vmem>>, %arg2: memref<128x128xbf16, #tpu.memory_space<vmem>>, %arg3: memref<1x128xf32, #tpu.memory_space<vmem>>, %arg4: memref<128x128xbf16, #tpu.memory_space<vmem>>, %arg5: memref<1x128xf32, #tpu.memory_space<vmem>>, %arg6: memref<8x128xf32, #tpu.memory_space<vmem>>) attributes {dimension_semantics = [#tpu.dimension_semantics<parallel>], iteration_bounds = array<i64: 2>, scalar_prefetch = 0 : i64, scratch_operands = 0 : i64, tpu.core_type = #tpu.core_type<tc>, window_params = [{transform_indices = @transform_0, window_bounds = array<i64: 8, 128>}, {pipeline_mode = #tpu.pipeline_mode<synchronous>, transform_indices = @transform_1, window_bounds = array<i64: 128, 128>}, {pipeline_mode = #tpu.pipeline_mode<synchronous>, transform_indices = @transform_2, window_bounds = array<i64: 1, 128>}, {pipeline_mode = #tpu.pipeline_mode<synchronous>, transform_indices = @transform_3, window_bounds = array<i64: 128, 128>}, {pipeline_mode = #tpu.pipeline_mode<synchronous>, transform_indices = @transform_4, window_bounds = array<i64: 1, 128>}, {transform_indices = @transform_5, window_bounds = array<i64: 8, 128>}]} {
    %c0 = arith.constant 0 : index
    %c0_0 = arith.constant 0 : index
    %0 = vector.load %arg1[%c0, %c0_0] : memref<8x128xbf16, #tpu.memory_space<vmem>>, vector<8x128xbf16>
    %c0_1 = arith.constant 0 : index
    %c0_2 = arith.constant 0 : index
    %1 = vector.load %arg2[%c0_1, %c0_2] : memref<128x128xbf16, #tpu.memory_space<vmem>>, vector<128x128xbf16>
    %c0_3 = arith.constant 0 : index
    %c0_4 = arith.constant 0 : index
    %2 = vector.load %arg3[%c0_3, %c0_4] : memref<1x128xf32, #tpu.memory_space<vmem>>, vector<1x128xf32>
    %c0_5 = arith.constant 0 : index
    %c0_6 = arith.constant 0 : index
    %3 = vector.load %arg4[%c0_5, %c0_6] : memref<128x128xbf16, #tpu.memory_space<vmem>>, vector<128x128xbf16>
    %c0_7 = arith.constant 0 : index
    %c0_8 = arith.constant 0 : index
    %4 = vector.load %arg5[%c0_7, %c0_8] : memref<1x128xf32, #tpu.memory_space<vmem>>, vector<1x128xf32>
    %cst = arith.constant dense<0.000000e+00> : vector<8x128xf32>
    %5 = tpu.matmul %0, %1, %cst {dimension_numbers = #tpu.dot_dimension_numbers<[1], [0], [0], [1], [0, 0, 1, 1], [], []>} : vector<8x128xbf16>, vector<128x128xbf16>, vector<8x128xf32> -> vector<8x128xf32>
    %6 = vector.broadcast %2 : vector<1x128xf32> to vector<8x128xf32>
    %7 = arith.addf %5, %6 : vector<8x128xf32>
    %cst_9 = arith.constant 0.000000e+00 : f32
    %8 = vector.broadcast %cst_9 : f32 to vector<8x128xf32>
    %9 = arith.maximumf %7, %8 : vector<8x128xf32>
    %10 = arith.truncf %9 : vector<8x128xf32> to vector<8x128xbf16>
    %cst_10 = arith.constant dense<0.000000e+00> : vector<8x128xf32>
    %11 = tpu.matmul %10, %3, %cst_10 {dimension_numbers = #tpu.dot_dimension_numbers<[1], [0], [0], [1], [0, 0, 1, 1], [], []>} : vector<8x128xbf16>, vector<128x128xbf16>, vector<8x128xf32> -> vector<8x128xf32>
    %12 = vector.broadcast %4 : vector<1x128xf32> to vector<8x128xf32>
    %13 = arith.addf %11, %12 : vector<8x128xf32>
    %c0_11 = arith.constant 0 : index
    %c0_12 = arith.constant 0 : index
    %14 = vector.load %arg6[%c0_11, %c0_12] : memref<8x128xf32, #tpu.memory_space<vmem>>, vector<8x128xf32>
    tpu.vector_store %arg6[%c0_11, %c0_12], %13 {strides = array<i32>} : memref<8x128xf32, #tpu.memory_space<vmem>>, vector<8x128xf32>,
    return
  }
  func.func @transform_0(%arg0: i32) -> (i32, i32) {
    %c0_i32 = arith.constant 0 : i32
    %c0_i32_0 = arith.constant 0 : i32
    return %arg0, %c0_i32 : i32, i32
  }
  func.func @transform_1(%arg0: i32) -> (i32, i32) {
    %c0_i32 = arith.constant 0 : i32
    %c0_i32_0 = arith.constant 0 : i32
    %c0_i32_1 = arith.constant 0 : i32
    return %c0_i32, %c0_i32_0 : i32, i32
  }
  func.func @transform_2(%arg0: i32) -> (i32, i32) {
    %c0_i32 = arith.constant 0 : i32
    %c0_i32_0 = arith.constant 0 : i32
    %c0_i32_1 = arith.constant 0 : i32
    return %c0_i32, %c0_i32_0 : i32, i32
  }
  func.func @transform_3(%arg0: i32) -> (i32, i32) {
    %c0_i32 = arith.constant 0 : i32
    %c0_i32_0 = arith.constant 0 : i32
    %c0_i32_1 = arith.constant 0 : i32
    return %c0_i32, %c0_i32_0 : i32, i32
  }
  func.func @transform_4(%arg0: i32) -> (i32, i32) {
    %c0_i32 = arith.constant 0 : i32
    %c0_i32_0 = arith.constant 0 : i32
    %c0_i32_1 = arith.constant 0 : i32
    return %c0_i32, %c0_i32_0 : i32, i32
  }
  func.func @transform_5(%arg0: i32) -> (i32, i32) {
    %c0_i32 = arith.constant 0 : i32
    %c0_i32_0 = arith.constant 0 : i32
    return %arg0, %c0_i32 : i32, i32
  }
}

</mosaic_0001>

<bundles_post_ra>
// kernel: tpu_custom_call.1
= control target key start
LH: loop header
LB: loop body
LE: loop exit
PB: predicated region body
PF: predicated region fallthrough
CT: control target
= control target key end

     0   :  { %10 = vsyncpa [#allocation3], 0  ;;  %s1389_s0 = inlined_call_operand.hbm [shape: bf16[16,128], index: 0, kind: input, shape index: {}]   ;;  %s1390_s1 = inlined_call_operand.hbm [shape: bf16[128,128], index: 1, kind: input, shape index: {}]   ;;  %s1391_s2 = inlined_call_operand.hbm [shape: f32[1,128], index: 2, kind: input, shape index: {}]   ;;  %s1392_s3 = inlined_call_operand.hbm [shape: bf16[128,128], index: 3, kind: input, shape index: {}]   ;;  %s1393_s4 = inlined_call_operand.hbm [shape: f32[1,128], index: 4, kind: input, shape index: {}]   ;;  %s1394_s5 = inlined_call_operand.hbm [shape: f32[16,128], index: 5, kind: output, shape index: {}]  }
   0x1   :  { %12 = vsyncpa [#allocation3 + $0x1], 0 }
   0x2   :  { %13 = vsyncpa [#allocation6], 0 }
   0x3   :  { %14 = vsyncpa [#allocation9], 0 }
   0x4   :  { %15 = vsyncpa [#allocation4], 0 }
   0x5   :  { %17 = vsyncpa [#allocation4 + $0x1], 0  ;;  %s1104_s18 = smov 0   ;;  %s1106_s19 = smov 0  }
   0x6   :  { %s1108_s20 = smov 0   ;;  %s1110_s21 = smov 0  }
   0x7 LB: > { %s1064_s22 = smov [#allocation5]   ;;  %s1125_s24 = sadd.s32 4294967295, %s1062_s21   ;;  %s1062_s21 = sphi %s1110_s21, %s1418_s21   ;;  %s1058_s20 = sphi %s1108_s20, %s1417_s20   ;;  %s1054_s19 = sphi %s1106_s19, %s1416_s19   ;;  %s1050_s18 = sphi %s1104_s18, %s1415_s18  }
   0x8   : > { %s176_s23 = sshll.u32 %s1064_s22, 4  ;;  %p644_p0 = scmp.ge.s32.totalorder %s1062_s21, 1  ;;  %s1130_s23 = int_to_ptr.vmem [resolvable:$true] %s176_s23 }
   0x9   : > { %p1395_p1 = scmp.eq.s32.totalorder %s1125_s24, 0  ;;  %p164_p2 = scmp.lt.s32.totalorder %s1062_s21, 3 }
   0xa   : > { %s1065_s26 = smov [#allocation8]   ;;  %s1066_s29 = smov [#allocation7]  }
   0xb   : > { %p1132_p3 = pnand %p644_p0, %p164_p2  ;;  %s200_s27 = sshll.u32 %s1065_s26, 4  ;;  %s1145_s27 = int_to_ptr.vmem [resolvable:$true] %s200_s27 }
   0xc   : > { %s190_s30 = sshll.u32 %s1066_s29, 4  ;;  %s846_s8 = scalar_lea.hbm %s1390_s1, 1024  ;;  %s1147_s30 = int_to_ptr.vmem [resolvable:$true] %s190_s30 }
   0xd   : > { %s1398_s25 = scalar_select %p1132_p3, 1, 0 }
   0xe   : > { %p759_p5 = pneg %p1132_p3  ;;  %p847_p7 = scmp.ne.s32.totalorder %s1390_s1, %s846_s8 }
   0xf   : > { %p853_p11 = scmp.lt.u32.totalorder %s846_s8, %s1390_s1 }
  0x10   : > { %p1141_p6 = pnand %p759_p5, %p1395_p1 }
  0x12   : > { %p1157_p8 = pneg %p1141_p6 }
  0x14   : > { %p849_p9 = pnand %p1157_p8, %p847_p7 }
  0x16   : > { %p850_p10 = pneg %p849_p9 }
  0x18   : > { %p855_p12 = pnand %p853_p11, %p850_p10 }
  0x1a   : > { %858 = shalt.err (!%p855_p12)
}
  0x1b   : > { %s859_s14 = scalar_lea.vmem %s1130_s23, 1024  ;;  %p867_p5 = scmp.lt.s32.totalorder %s1130_s23, %s1130_s23 }
  0x1c   : > { %p860_p13 = scmp.ne.s32.totalorder %s1130_s23, %s859_s14  ;;  %p868_p4 = scmp.lt.s32.totalorder %s859_s14, %s859_s14 }
  0x1e   : > { %p862_p0 = pnand %p860_p13, %p1157_p8  ;;  %p869_p7 = por %p868_p4, %p867_p5 }
  0x20   : > { %p863_p2 = pneg %p862_p0 }
  0x22   : > { %p870_p9 = pnand %p869_p7, %p863_p2 }
  0x24   : > { %873 = shalt.err (!%p870_p9)
}
  0x25   : > { %s1067_s15 = smov 64   ;;  %s1068_s16 = smov 4  }
  0x26   : > { %762 = dma.hbm_to_vmem [thread:$0]  (!%p1141_p6), %s1390_s1, 1024, %s1130_s23, [#allocation6], %s1067_s15, %s1067_s15, %s1068_s16  }
  0x27   : > { %s874_s6 = scalar_lea.hbm %s1392_s3, 1024 }
  0x28   : > { %p875_p4 = scmp.ne.s32.totalorder %s1392_s3, %s874_s6  ;;  %p881_p12 = scmp.lt.u32.totalorder %s874_s6, %s1392_s3 }
  0x2a   : > { %p877_p10 = pnand %p875_p4, %p1157_p8 }
  0x2c   : > { %p878_p11 = pneg %p877_p10 }
  0x2e   : > { %p883_p13 = pnand %p881_p12, %p878_p11 }
  0x30   : > { %886 = shalt.err (!%p883_p13)
}
  0x31   : > { %s887_s23 = scalar_lea.vmem %s1145_s27, 1024  ;;  %p895_p7 = scmp.lt.s32.totalorder %s1145_s27, %s1145_s27 }
  0x32   : > { %p888_p0 = scmp.ne.s32.totalorder %s1145_s27, %s887_s23  ;;  %p896_p9 = scmp.lt.s32.totalorder %s887_s23, %s887_s23 }
  0x34   : > { %p890_p2 = pnand %p888_p0, %p1157_p8  ;;  %p897_p4 = por %p896_p9, %p895_p7 }
  0x36   : > { %p891_p5 = pneg %p890_p2 }
  0x38   : > { %p898_p10 = pnand %p897_p4, %p891_p5 }
  0x3a   : > { %901 = shalt.err (!%p898_p10)
}
  0x3b   : > { %768 = dma.hbm_to_vmem [thread:$0]  (!%p1141_p6), %s1392_s3, 1024, %s1145_s27, [#allocation9], %s1067_s15, %s1067_s15, %s1068_s16  }
  0x3c   : > { %s902_s22 = scalar_lea.hbm %s1391_s2, 16 }
  0x3d   : > { %p903_p11 = scmp.ne.s32.totalorder %s1391_s2, %s902_s22  ;;  %p909_p0 = scmp.lt.u32.totalorder %s902_s22, %s1391_s2 }
  0x3f   : > { %p905_p12 = pnand %p903_p11, %p1157_p8 }
  0x41   : > { %p906_p13 = pneg %p905_p12 }
  0x43   : > { %p911_p2 = pnand %p909_p0, %p906_p13 }
  0x45   : > { %914 = shalt.err (!%p911_p2)
}
  0x46   : > { %s915_s27 = scalar_lea.vmem %s1147_s30, 16  ;;  %s922_s15 = scalar_lea.vmem %s1147_s30, 32 }
  0x47   : > { %p916_p5 = scmp.ne.s32.totalorder %s1147_s30, %s915_s27  ;;  %p923_p4 = scmp.lt.s32.totalorder %s1147_s30, %s1147_s30 }
  0x48   : > { %p924_p10 = scmp.lt.s32.totalorder %s922_s15, %s915_s27 }
  0x49   : > { %p918_p7 = pnand %p916_p5, %p1157_p8 }
  0x4a   : > { %p925_p11 = por %p924_p10, %p923_p4 }
  0x4b   : > { %p919_p9 = pneg %p918_p7 }
  0x4d   : > { %p926_p12 = pnand %p925_p11, %p919_p9 }
  0x4f   : > { %929 = shalt.err (!%p926_p12)
}
  0x50   : > { %765 = dma.hbm_to_vmem [thread:$0]  (!%p1141_p6), %s1391_s2, 16, %s1147_s30, [#allocation6]  }
  0x51   : > { %s1069_s9 = smov [#allocation10]   ;;  %s930_s13 = scalar_lea.hbm %s1393_s4, 16 }
  0x52   : > { %s214_s10 = sshll.u32 %s1069_s9, 4  ;;  %p931_p13 = scmp.ne.s32.totalorder %s1393_s4, %s930_s13  ;;  %s215_s10 = int_to_ptr.vmem [resolvable:$true] %s214_s10 }
  0x53   : > { %p937_p5 = scmp.lt.u32.totalorder %s930_s13, %s1393_s4 }
  0x54   : > { %p933_p0 = pnand %p931_p13, %p1157_p8 }
  0x56   : > { %p934_p2 = pneg %p933_p0 }
  0x58   : > { %p939_p7 = pnand %p937_p5, %p934_p2 }
  0x5a   : > { %942 = shalt.err (!%p939_p7)
}
  0x5b   : > { %s943_s30 = scalar_lea.vmem %s215_s10, 16  ;;  %s950_s29 = scalar_lea.vmem %s215_s10, 32 }
  0x5c   : > { %p944_p9 = scmp.ne.s32.totalorder %s215_s10, %s943_s30  ;;  %p951_p11 = scmp.lt.s32.totalorder %s215_s10, %s215_s10 }
  0x5d   : > { %p952_p12 = scmp.lt.s32.totalorder %s950_s29, %s943_s30 }
  0x5e   : > { %p946_p4 = pnand %p944_p9, %p1157_p8 }
  0x5f   : > { %p953_p1 = por %p952_p12, %p951_p11 }
  0x60   : > { %p947_p10 = pneg %p946_p4 }
  0x62   : > { %p954_p3 = pnand %p953_p1, %p947_p10 }
  0x64   : > { %957 = shalt.err (!%p954_p3)
}
  0x65   : > { %771 = dma.hbm_to_vmem [thread:$0]  (!%p1141_p6), %s1393_s4, 16, %s215_s10, [#allocation9]  }
  0x66   : > { %s643_s11 = sadd.s32 4294967294, %s1062_s21   ;;  %s1245_s28 = sadd.s32 1, %s1062_s21  }
  0x67   : > { %s27_s27 = ssub.s32 %s1062_s21, %s1245_s28  ;;  %s30_s15 = sadd.s32 1, %s1058_s20 }
  0x68   : > { %p28_p1 = scmp.eq.s32.totalorder %s27_s27, 0  ;;  %p37_p3 = scmp.ne.s32.totalorder %s1058_s20, %s1054_s19 }
  0x69   : > { %p38_p8 = scmp.eq.s32.totalorder %s1062_s21, 0  ;;  %p43_p13 = scmp.ne.s32.totalorder %s1054_s19, %s1050_s18 }
  0x6a   : > { %s1256_s16 = scalar_select %p28_p1, %s1058_s20, %s30_s15  }
  0x6b   : > { %p1258_p0 = por %p38_p8, %p37_p3  ;;  %p1402_p2 = scmp.eq.s32.totalorder %s1125_s24, 0 }
  0x6c   : > { %p151_p5 = scmp.eq.s32.totalorder %s1125_s24, 1  ;;  %p157_p7 = scmp.eq.s32.totalorder %s643_s11, 1 }
  0x6d   : > { %p1264_p6 = por %p1402_p2, %p43_p13  ;;  %p784_p9 = scmp.lt.s32.totalorder %s1062_s21, 2 }
  0x6e   : > { %s225_s10 = sand.u32 1, %s1058_s20   ;;  %p1271_p4 = por %p151_p5, %p37_p3 }
  0x6f   : > { %p1275_p10 = por %p157_p7, %p43_p13  ;;  %s650_s13 = sshll.u32 %s225_s10, 2 }
  0x70   : > { %s1404_s23 = scalar_select %p1271_p4, 1, 0 }
  0x71   : > { %s1405_s12 = scalar_select %p1275_p10, 1, 0 }
  0x72   : > { %s651_s14 = sshll.u32 %s1062_s21, 6  ;;  %s229_s30 = scalar_lea.vmem [#allocation2], %s650_s13 }
  0x73   : > { %s1283_s26 = scalar_lea.hbm %s1389_s0, %s651_s14  ;;  %s236_s29 = sshll.u32 %s229_s30, 4  ;;  %s1285_s29 = int_to_ptr.vmem [resolvable:$true] %s236_s29 }
  0x74   : > { %p1289_p11 = pnand %p784_p9, %p1258_p0  ;;  %s226_s7 = scalar_lea.sflag [#allocation3], %s225_s10 }
  0x75   : > { %s958_s11 = scalar_lea.hbm %s1283_s26, 64  ;;  %s963_s13 = scalar_lea.hbm %s1389_s0, 128 }
  0x76   : > { %p959_p12 = scmp.ne.s32.totalorder %s1283_s26, %s958_s11  ;;  %p960_p1 = pneg %p1289_p11 }
  0x77   : > { %p964_p13 = scmp.lt.u32.totalorder %s1283_s26, %s1389_s0  ;;  %p965_p0 = scmp.lt.u32.totalorder %s963_s13, %s958_s11 }
  0x78   : > { %p961_p3 = pnand %p960_p1, %p959_p12  ;;  %p967_p5 = scmp.lt.u32.totalorder %s958_s11, %s1283_s26 }
  0x79   : > { %p966_p2 = por %p965_p0, %p964_p13 }
  0x7a   : > { %p962_p8 = pneg %p961_p3 }
  0x7b   : > { %p968_p7 = por %p967_p5, %p966_p2 }
  0x7d   : > { %p969_p9 = pnand %p968_p7, %p962_p8 }
  0x7f   : > { %972 = shalt.err (!%p969_p9)
}
  0x80   : > { %s973_s10 = scalar_lea.vmem %s1285_s29, 64  ;;  %s1070_s17 = smov [#allocation2]  }
  0x81   : > { %p974_p12 = scmp.ne.s32.totalorder %s1285_s29, %s973_s10  ;;  %s978_s22 = sshll.u32 %s1070_s17, 4  ;;  %s979_s22 = int_to_ptr.vmem [resolvable:$false] %s978_s22 }
  0x82   : > { %s980_s30 = scalar_lea.vmem %s979_s22, 128  ;;  %p981_p4 = scmp.lt.s32.totalorder %s1285_s29, %s979_s22 }
  0x83   : > { %p976_p3 = pnand %p974_p12, %p960_p1  ;;  %p982_p13 = scmp.lt.s32.totalorder %s980_s30, %s973_s10 }
  0x85   : > { %p977_p10 = pneg %p976_p3  ;;  %p983_p0 = por %p982_p13, %p981_p4 }
  0x87   : > { %p984_p2 = pnand %p983_p0, %p977_p10 }
  0x89   : > { %987 = shalt.err (!%p984_p2)
}
  0x8a   : > { %775 = dma.hbm_to_vmem [thread:$0]  (!%p1289_p11), %s1283_s26, 64, %s1285_s29, %s226_s7  }
  0x8b   : > { %p1407_p8 = scmp.ne.s32.totalorder %s1398_s25, 0 }
  0x8c   : > { %s1321_s11 = sand.u32 (!%p1407_p8), 1, %s1054_s19  }
  0x8d   : > { %245 = sbr.rel (%p1407_p8) target bundleno = 635 (0x27b), region = 40  ;;  %s653_s27 = sshll.u32 (!%p1407_p8), %s1321_s11, 2 }
  0x8e   : > { %s248_s15 = scalar_lea.sflag (!%p1407_p8), [#allocation3], %s1321_s11  ;;  %s1325_s13 = scalar_lea.vmem (!%p1407_p8), [#allocation2], %s653_s27 }
  0x94   : > { %1033 = dma.done.wait (%p1264_p6), %s248_s15, 64  }
  0x95   : > { %1035 = vsyncadd (%p1264_p6), %s248_s15, 4294967232  ;;  %p1408_p4 = scmp.eq.s32.totalorder %s1125_s24, 0 }
  0x97   : > { %1037 = dma.done.wait (%p1408_p4), [#allocation6], 1040   ;;  %p1409_p10 = pmov %p1408_p4 }
  0x98   : > { %p1410_p11 = pmov %p1408_p4 }
  0x99   : > { %1039 = vsyncadd (%p1409_p10), [#allocation6], 4294966256 }
  0x9a   : > { %1041 = dma.done.wait (%p1410_p11), [#allocation9], 1040   ;;  %p1411_p1 = pmov %p1408_p4 }
  0x9b   : > { %v1071_v0 = vmov 0.0   ;;  %vm1072_vm0 = vmmov 0   ;;  %v830_v1 = vld [vmem:[#allocation5] sm:$0xff]   ;;  %v831_v2 = vld [vmem:[#allocation5 + $0x8] sm:$0xff]   ;;  %v832_v3 = vld [vmem:[#allocation5 + $0x10] sm:$0xff]   ;;  %s658_s25 = sshll.u32 %s1321_s11, 3 }
  0x9c   : > { %1043 = vsyncadd (%p1411_p1), [#allocation9], 4294966256  ;;  %699 = vmatprep.subr.bf16.mxu0 %v1071_v0  ;;  %715 = vmatprep.mubr.msk.bf16.mxu0 %vm1072_vm0, %v1071_v0  ;;  %v838_v4 = vld [vmem:[#allocation8] sm:$0xff]   ;;  %v833_v5 = vld [vmem:[#allocation5 + $0x18] sm:$0xff]   ;;  %s678_s9 = sshll.u32 %s1125_s24, 7  ;;  %s293_s26 = scalar_lea.vmem [#allocation11], %s658_s25 }
  0x9d   : > { %719 = vmatprep.subr.bf16.mxu1 %v1071_v0  ;;  %735 = vmatprep.mubr.msk.bf16.mxu1 %vm1072_vm0, %v1071_v0  ;;  %v839_v6 = vld [vmem:[#allocation8 + $0x8] sm:$0xff]   ;;  %v834_v7 = vld [vmem:[#allocation5 + $0x20] sm:$0xff]   ;;  %v840_v8 = vld [vmem:[#allocation8 + $0x10] sm:$0xff]   ;;  %s535_s29 = sshll.u32 %s293_s26, 4  ;;  %s1345_s8 = scalar_lea.hbm %s1394_s5, %s678_s9  ;;  %s1347_s29 = int_to_ptr.vmem [resolvable:$true] %s535_s29 }
  0x9e   : > { %700 = vmatpush3.bf16.msra.mxu0 %v830_v1  ;;  %720 = vmatpush3.bf16.msra.mxu1 %v838_v4  ;;  %v835_v9 = vld [vmem:[#allocation5 + $0x28] sm:$0xff]   ;;  %v841_v10 = vld [vmem:[#allocation8 + $0x18] sm:$0xff]   ;;  %v836_v11 = vld [vmem:[#allocation5 + $0x30] sm:$0xff]   ;;  %s522_s14 = scalar_lea.sflag [#allocation4], %s1321_s11  ;;  %s988_s24 = scalar_lea.vmem %s1347_s29, 128 }
  0x9f   : > { %701 = vmatprep.subr.bf16.mxu0 %v1071_v0  ;;  %721 = vmatprep.subr.bf16.mxu1 %v1071_v0  ;;  %v842_v12 = vld [vmem:[#allocation8 + $0x20] sm:$0xff]   ;;  %v837_v13 = vld [vmem:[#allocation5 + $0x38] sm:$0xff]   ;;  %v843_v14 = vld [vmem:[#allocation8 + $0x28] sm:$0xff]   ;;  %p989_p6 = scmp.ne.s32.totalorder %s1347_s29, %s988_s24  ;;  %p1412_p5 = scmp.ne.s32.totalorder %s1404_s23, 0 }
  0xa0   : > { %v295_v15 = vld [vmem:[%s1325_s13] sm:$0xf]  ;;  %v659_v18 = vld [vmem:[#allocation7] ss:$0 sm:$0xff]  ;;  %v668_v26 = vld [vmem:[#allocation10] ss:$0 sm:$0xff] }
  0xa1   : > { %v844_v16 = vld [vmem:[#allocation8 + $0x30] sm:$0xff]   ;;  %v845_v17 = vld [vmem:[#allocation8 + $0x38] sm:$0xff]   ;;  %p990_p7 = pnand %p989_p6, %p1412_p5  ;;  %s1073_s10 = smov [#allocation11]  }
  0xa2   : > { %702 = vmatpush3.bf16.msra.mxu0 %v831_v2  ;;  %722 = vmatpush3.bf16.msra.mxu1 %v839_v6  ;;  %s992_s17 = sshll.u32 %s1073_s10, 4  ;;  %s993_s17 = int_to_ptr.vmem [resolvable:$false] %s992_s17 }
  0xa3   : > { %703 = vmatprep.subr.bf16.mxu0 %v1071_v0  ;;  %723 = vmatprep.subr.bf16.mxu1 %v1071_v0  ;;  %p991_p9 = pneg %p990_p7  ;;  %s994_s22 = scalar_lea.vmem %s993_s17, 256 }
  0xa4   : > { %p995_p12 = scmp.lt.s32.totalorder %s1347_s29, %s993_s17  ;;  %p996_p3 = scmp.lt.s32.totalorder %s994_s22, %s988_s24 }
  0xa6   : > { %704 = vmatpush3.bf16.msra.mxu0 %v832_v3  ;;  %724 = vmatpush3.bf16.msra.mxu1 %v840_v8  ;;  %p997_p13 = por %p996_p3, %p995_p12 }
  0xa7   : > { %705 = vmatprep.subr.bf16.mxu0 %v1071_v0  ;;  %725 = vmatprep.subr.bf16.mxu1 %v1071_v0 }
  0xa8   : > { %p998_p0 = pnand %p997_p13, %p991_p9 }
  0xaa   : > { %706 = vmatpush3.bf16.msra.mxu0 %v833_v5  ;;  %726 = vmatpush3.bf16.msra.mxu1 %v841_v10 }
  0xab   : > { %707 = vmatprep.subr.bf16.mxu0 %v1071_v0  ;;  %727 = vmatprep.subr.bf16.mxu1 %v1071_v0 }
  0xae   : > { %708 = vmatpush3.bf16.msra.mxu0 %v834_v7  ;;  %728 = vmatpush3.bf16.msra.mxu1 %v842_v12 }
  0xaf   : > { %709 = vmatprep.subr.bf16.mxu0 %v1071_v0  ;;  %729 = vmatprep.subr.bf16.mxu1 %v1071_v0 }
  0xb2   : > { %710 = vmatpush3.bf16.msra.mxu0 %v835_v9  ;;  %730 = vmatpush3.bf16.msra.mxu1 %v843_v14 }
  0xb3   : > { %711 = vmatprep.subr.bf16.mxu0 %v1071_v0  ;;  %731 = vmatprep.subr.bf16.mxu1 %v1071_v0 }
  0xb6   : > { %712 = vmatpush3.bf16.msra.mxu0 %v836_v11  ;;  %732 = vmatpush3.bf16.msra.mxu1 %v844_v16 }
  0xb7   : > { %713 = vmatprep.subr.bf16.mxu0 %v1071_v0  ;;  %733 = vmatprep.subr.bf16.mxu1 %v1071_v0 }
  0xba   : > { %714 = vmatpush3.bf16.msra.mxu0 %v837_v13  ;;  %734 = vmatpush3.bf16.msra.mxu1 %v845_v17 }
  0xbd   : > { %716 = vmatmul.mubr.bf16.vlgmr.msra.gmra.mrb[0].mxu0 %v295_v15 }
 0x190   : > { %v418_v19 = vpop.f32.mrb[0].mxu0 }
 0x191   : > { %v419_v20 = vadd.f32 %v659_v18, %v418_v19  ;;  %v717_v21 = vpop.f32.mrb[1].mxu0 }
 0x192   : > { %v421_v22 = vpop.f32.mrb[2].mxu0 }
 0x193   : > { %v424_v23 = vmax.f32 %v419_v20, 0.0  ;;  %v718_v24 = vpop.f32.mrb[3].mxu0 }
 0x195   : > { %v425_v25 = vpack.c.bf16 %v424_v23, %v424_v23 }
 0x197   : > { %736 = vmatmul.mubr.bf16.vlgmr.msra.gmra.mrb[0].mxu1 %v425_v25 }
 0x26a   : > { %v514_v27 = vpop.f32.mrb[0].mxu1 }
 0x26b   : > { %v515_v28 = vadd.f32 %v668_v26, %v514_v27  ;;  %v737_v29 = vpop.f32.mrb[1].mxu1 }
 0x26c   : > { %v517_v30 = vpop.f32.mrb[2].mxu1 }
 0x26d   : > { %520 = vst [vmem:[%s293_s26] sm:$0xff] %v515_v28  ;;  %v738_v31 = vpop.f32.mrb[3].mxu1 }
 0x26e   : > { %1001 = shalt.err (!%p998_p0)
}
 0x26f   : > { %s1002_s30 = scalar_lea.hbm %s1345_s8, 128  ;;  %s1006_s15 = scalar_lea.hbm %s1394_s5, 256 }
 0x270   : > { %p1003_p2 = scmp.ne.s32.totalorder %s1345_s8, %s1002_s30  ;;  %p1007_p10 = scmp.lt.u32.totalorder %s1345_s8, %s1394_s5 }
 0x271   : > { %p1008_p11 = scmp.lt.u32.totalorder %s1006_s15, %s1002_s30  ;;  %p1010_p6 = scmp.lt.u32.totalorder %s1002_s30, %s1345_s8 }
 0x272   : > { %p1004_p8 = pnand %p1003_p2, %p1412_p5 }
 0x273   : > { %p1009_p1 = por %p1008_p11, %p1007_p10 }
 0x274   : > { %p1005_p4 = pneg %p1004_p8 }
 0x275   : > { %p1011_p7 = por %p1010_p6, %p1009_p1 }
 0x277   : > { %p1012_p9 = pnand %p1011_p7, %p1005_p4 }
 0x279   : > { %1015 = shalt.err (!%p1012_p9)
}
 0x27a   : > { %757 = dma.vmem_to_hbm [thread:$0]  (%p1412_p5), %s1347_s29, 128, %s1345_s8, %s522_s14  }
 0x27b PF: > { %s547_s9 = sand.u32 1, %s1050_s18   ;;  %p1413_p12 = scmp.ne.s32.totalorder %s1405_s12, 0 }
 0x27c   : > { %p1414_p3 = scmp.ge.s32.totalorder %s1062_s21, 2  ;;  %s548_s26 = scalar_lea.sflag [#allocation4], %s547_s9 }
 0x27e   : > { %p777_p13 = pnand %p1414_p3, %p1413_p12 }
 0x280   : > { %1045 = dma.done.wait (!%p777_p13), %s548_s26, 128  }
 0x281   : > { %1047 = vsyncadd (!%p777_p13), %s548_s26, 4294967168  ;;  %p20_p0 = scmp.ge.s32.totalorder %s1245_s28, 4   ;;  %s1415_s18 = smov %s1054_s19 }
 0x282   : > { %s1416_s19 = smov %s1058_s20  ;;  %s1417_s20 = smov %s1256_s16 }
 0x283   : > { %s1418_s21 = smov %s1245_s28  ;;  %22 = sbr.rel (!%p20_p0) target bundleno = 7 (0x7), region = 101 }
 0x28a   :  { %553 = vsyncpa [#allocation3], 1 }
 0x28b   :  { %555 = vsyncpa [#allocation3 + $0x1], 1 }
 0x28c   :  { %556 = vsyncpa [#allocation6], 1 }
 0x28d   :  { %557 = vsyncpa [#allocation9], 1 }
 0x28e   :  { %558 = vsyncpa [#allocation4], 1 }
 0x28f   :  { %560 = vsyncpa [#allocation4 + $0x1], 1 }

</bundles_post_ra>
